<compile_context>
chip_gen: v5e
topology: v5e:2x2
jax: 0.10.0
libtpu: 0.0.40
codegen_flags: <defaults>
</compile_context>

<pallas_src>
import functools

import jax
import jax.numpy as jnp
import numpy as np
from jax.experimental import pallas as pl
from jax.experimental.pallas import tpu as pltpu


def _gelu_tanh(x):
    # GELU(approximate='tanh'), matches nn.GELU(approximate='tanh'). Keep f32.
    c = jnp.sqrt(2.0 / jnp.pi).astype(x.dtype)
    return 0.5 * x * (1.0 + jnp.tanh(c * (x + 0.044715 * x * x * x)))


# --------------------------------------------------------------- expert kernel
def _moe_kernel(mask_ref,            # SMEM (num_tiles, E) int32  (scalar prefetch)
                x_ref,               # (TM, D)  bf16  token tile
                wg_ref, wu_ref,      # (D, I)   bf16  gate / up proj of expert e
                wd_ref,              # (I, D)   bf16  down proj of expert e
                comb_ref,            # (TM, 1)  f32   combine-weight column for e
                out_ref,             # (TM, D)  f32
                acc_ref):            # VMEM (TM, D) f32 scratch accumulator
    i = pl.program_id(0)             # token tile   (parallel)
    e = pl.program_id(1)             # expert       (arbitrary, last -> resident acc)

    @pl.when(e == 0)
    def _init():
        acc_ref[...] = jnp.zeros_like(acc_ref)

    # Skip experts that no token in this tile routed to.
    @pl.when(mask_ref[i, e] != 0)
    def _compute():
        x = x_ref[...]                                                     # bf16
        g = jnp.dot(x, wg_ref[...], preferred_element_type=jnp.float32)   # (TM, I) f32
        u = jnp.dot(x, wu_ref[...], preferred_element_type=jnp.float32)   # (TM, I) f32
        h = _gelu_tanh(g) * u                                              # f32 VPU math
        y = jnp.dot(h.astype(jnp.bfloat16), wd_ref[...],
                    preferred_element_type=jnp.float32)                    # (TM, D) f32
        acc_ref[...] += comb_ref[...] * y

    @pl.when(e == pl.num_programs(1) - 1)
    def _finalize():
        out_ref[...] = acc_ref[...].astype(out_ref.dtype)


def moe_experts(x_bf16, wg_all, wu_all, wd_all, comb_t, tile_mask, *, tm):
    """x_bf16: (T_pad, D) bf16; comb_t: (E, T_pad, 1) f32; tile_mask: (num_tiles, E) i32."""
    T_pad, D = x_bf16.shape
    E, _, I = wg_all.shape
    num_tiles = T_pad // tm

    grid_spec = pltpu.PrefetchScalarGridSpec(
        num_scalar_prefetch=1,                     # tile_mask -> SMEM
        grid=(num_tiles, E),                       # expert axis last (reduction)
        in_specs=[
            pl.BlockSpec((tm, D), lambda i, e, m: (i, 0)),                   # x tile
            pl.BlockSpec((pl.Squeezed(), D, I), lambda i, e, m: (e, 0, 0)),  # gate W
            pl.BlockSpec((pl.Squeezed(), D, I), lambda i, e, m: (e, 0, 0)),  # up W
            pl.BlockSpec((pl.Squeezed(), I, D), lambda i, e, m: (e, 0, 0)),  # down W
            pl.BlockSpec((pl.Squeezed(), tm, 1), lambda i, e, m: (e, i, 0)), # comb col
        ],
        out_specs=pl.BlockSpec((tm, D), lambda i, e, m: (i, 0)),
        scratch_shapes=[pltpu.VMEM((tm, D), jnp.float32)],
    )
    return pl.pallas_call(
        _moe_kernel,
        out_shape=jax.ShapeDtypeStruct((T_pad, D), jnp.float32),
        grid_spec=grid_spec,
        compiler_params=pltpu.CompilerParams(
            dimension_semantics=("parallel", "arbitrary"),
            vmem_limit_bytes=64 * 1024 * 1024,
        ),
    )(tile_mask, x_bf16, wg_all, wu_all, wd_all, comb_t)


# ------------------------------------------------------------------ full block
def _pick_token_tile(T):
    tm = 256
    if T < tm:
        tm = max(8, ((T + 7) // 8) * 8)   # 8-sublane aligned tile covering all tokens
    return tm


@functools.partial(jax.jit, static_argnames=("top_k",))
def sparse_moe_block(hidden_states, wgate, wg_all, wu_all, wd_all, top_k=2):
    """hidden_states: (B, S, D) float32. Returns (B, S, D) float32."""
    B, S, D = hidden_states.shape
    E = wgate.shape[0]
    T = B * S
    x2d = hidden_states.reshape(T, D).astype(jnp.float32)

    # Router in plain XLA (tiny matmul; keeping it f32 preserves routing exactly).
    scores = jax.nn.softmax(x2d @ wgate.T.astype(jnp.float32), axis=-1)   # (T, E)
    topk_weight, topk_idx = jax.lax.top_k(scores, top_k)                  # (T, k)

    onehot = jax.nn.one_hot(topk_idx, E, dtype=jnp.float32)               # (T, k, E)
    comb = jnp.einsum("tke,tk->te", onehot, topk_weight)                  # (T, E) dense combine
    sel = (jnp.sum(onehot, axis=1) > 0).astype(jnp.int32)                 # (T, E) 0/1 routing

    # Token tiling (+ zero padding so T_pad % tm == 0; padded rows have comb=0).
    tm = _pick_token_tile(T)
    T_pad = ((T + tm - 1) // tm) * tm
    pad = T_pad - T
    x_pad = jnp.pad(x2d, ((0, pad), (0, 0))).astype(jnp.bfloat16)         # (T_pad, D) bf16
    comb_pad = jnp.pad(comb, ((0, pad), (0, 0)))                          # (T_pad, E)
    sel_pad = jnp.pad(sel, ((0, pad), (0, 0)))                            # (T_pad, E)

    comb_t = jnp.transpose(comb_pad)[:, :, None]                          # (E, T_pad, 1)
    tile_mask = jnp.max(sel_pad.reshape(T_pad // tm, tm, E), axis=1)      # (tiles, E)
    tile_mask = tile_mask.astype(jnp.int32)

    y = moe_experts(
        x_pad,
        wg_all.astype(jnp.bfloat16),
        wu_all.astype(jnp.bfloat16),
        wd_all.astype(jnp.bfloat16),
        comb_t,
        tile_mask,
        tm=tm,
    )                                                                     # (T_pad, D) f32
    return y[:T].reshape(B, S, D)


# ------------------------------------------------------------------- reference
def sparse_moe_block_ref(hidden_states, wgate, wg_all, wu_all, wd_all, top_k=2):
    """Pure-JAX reference using the same bf16-weight / f32-accumulate math."""
    B, S, D = hidden_states.shape
    E = wgate.shape[0]
    x = hidden_states.reshape(-1, D).astype(jnp.float32)
    scores = jax.nn.softmax(x @ wgate.T, axis=-1)
    tw, ti = jax.lax.top_k(scores, top_k)
    comb = jnp.einsum("tke,tk->te", jax.nn.one_hot(ti, E, dtype=jnp.float32), tw)
    xb = x.astype(jnp.bfloat16)
    y = jnp.zeros((x.shape[0], D), jnp.float32)
    for e in range(E):
        g = jnp.dot(xb, wg_all[e].astype(jnp.bfloat16), preferred_element_type=jnp.float32)
        u = jnp.dot(xb, wu_all[e].astype(jnp.bfloat16), preferred_element_type=jnp.float32)
        h = _gelu_tanh(g) * u
        ye = jnp.dot(h.astype(jnp.bfloat16), wd_all[e].astype(jnp.bfloat16),
                     preferred_element_type=jnp.float32)
        y = y + comb[:, e:e + 1] * ye
    return y.reshape(B, S, D)


# ------------------------------------------------------------------------ main
if __name__ == "__main__":
    B, S, D = 2, 8, 32          # batch, seq, embed_dim
    E, I, TOP_K = 16, 64, 2     # num_experts, expert_hidden_dim, experts/token

    key = jax.random.PRNGKey(0)
    k_x, k_gate, k_g, k_u, k_d = jax.random.split(key, 5)

    hidden_states = jax.random.normal(k_x, (B, S, D), dtype=jnp.float32)

    # deterministic parameter init (kaiming-uniform-style bounds)
    b_in = 1.0 / np.sqrt(D)
    b_mid = 1.0 / np.sqrt(I)
    wgate = jax.random.uniform(k_gate, (E, D), jnp.float32, -b_in, b_in)     # router (E, D)
    wg_all = jax.random.uniform(k_g, (E, D, I), jnp.float32, -b_in, b_in)    # gate_proj^T
    wu_all = jax.random.uniform(k_u, (E, D, I), jnp.float32, -b_in, b_in)    # up_proj^T
    wd_all = jax.random.uniform(k_d, (E, I, D), jnp.float32, -b_mid, b_mid)  # down_proj^T

    out = sparse_moe_block(hidden_states, wgate, wg_all, wu_all, wd_all, top_k=TOP_K)
    out = jax.block_until_ready(out)

    ref = sparse_moe_block_ref(hidden_states, wgate, wg_all, wu_all, wd_all, top_k=TOP_K)
    np.testing.assert_allclose(np.asarray(out), np.asarray(ref), rtol=1e-2, atol=1e-2)

    print("KERNEL_OK")
</pallas_src>

<mosaic_0001>
module attributes {stable_mosaic.version = 11 : i64} {
  func.func @_moe_kernel(%arg0: i32, %arg1: i32, %arg2: memref<1x16xi32, #tpu.memory_space<smem>>, %arg3: memref<16x32xbf16, #tpu.memory_space<vmem>>, %arg4: memref<1x32x64xbf16, #tpu.memory_space<vmem>>, %arg5: memref<1x32x64xbf16, #tpu.memory_space<vmem>>, %arg6: memref<1x64x32xbf16, #tpu.memory_space<vmem>>, %arg7: memref<1x16x1xf32, #tpu.memory_space<vmem>>, %arg8: memref<16x32xf32, #tpu.memory_space<vmem>>, %arg9: memref<16x32xf32, #tpu.memory_space<vmem>>) attributes {dimension_semantics = [#tpu.dimension_semantics<parallel>, #tpu.dimension_semantics<arbitrary>], iteration_bounds = array<i64: 1, 16>, scalar_prefetch = 1 : i64, scratch_operands = 1 : i64, tpu.core_type = #tpu.core_type<tc>, window_params = [{transform_indices = @transform_0, window_bounds = array<i64: 16, 32>}, {transform_indices = @transform_1, window_bounds = array<i64: 1, 32, 64>}, {transform_indices = @transform_2, window_bounds = array<i64: 1, 32, 64>}, {transform_indices = @transform_3, window_bounds = array<i64: 1, 64, 32>}, {transform_indices = @transform_4, window_bounds = array<i64: 1, 16, 1>}, {transform_indices = @transform_5, window_bounds = array<i64: 16, 32>}]} {
    %c0_i32 = arith.constant 0 : i32
    %0 = arith.cmpi eq, %arg1, %c0_i32 : i32
    %1 = arith.extui %0 : i1 to i32
    %c0_i32_0 = arith.constant 0 : i32
    %2 = arith.cmpi ne, %1, %c0_i32_0 : i32
    scf.if %2 {
      %cst = arith.constant 0.000000e+00 : f32
      %12 = vector.broadcast %cst : f32 to vector<16x32xf32>
      %c0 = arith.constant 0 : index
      %c0_4 = arith.constant 0 : index
      %13 = vector.load %arg9[%c0, %c0_4] : memref<16x32xf32, #tpu.memory_space<vmem>>, vector<16x32xf32>
      tpu.vector_store %arg9[%c0, %c0_4], %12 {strides = array<i32>} : memref<16x32xf32, #tpu.memory_space<vmem>>, vector<16x32xf32>,
    } else {
    }
    %3 = arith.index_cast %arg0 : i32 to index
    %4 = arith.index_cast %arg1 : i32 to index
    %5 = memref.load %arg2[%3, %4] : memref<1x16xi32, #tpu.memory_space<smem>>
    %c0_i32_1 = arith.constant 0 : i32
    %6 = arith.cmpi ne, %5, %c0_i32_1 : i32
    %7 = arith.extui %6 : i1 to i32
    %c0_i32_2 = arith.constant 0 : i32
    %8 = arith.cmpi ne, %7, %c0_i32_2 : i32
    scf.if %8 {
      %c0 = arith.constant 0 : index
      %c0_4 = arith.constant 0 : index
      %12 = vector.load %arg3[%c0, %c0_4] : memref<16x32xbf16, #tpu.memory_space<vmem>>, vector<16x32xbf16>
      %c0_5 = arith.constant 0 : index
      %c0_6 = arith.constant 0 : index
      %c0_7 = arith.constant 0 : index
      %13 = vector.load %arg4[%c0_5, %c0_6, %c0_7] : memref<1x32x64xbf16, #tpu.memory_space<vmem>>, vector<1x32x64xbf16>
      %14 = vector.shape_cast %13 : vector<1x32x64xbf16> to vector<32x64xbf16>
      %cst = arith.constant dense<0.000000e+00> : vector<16x64xf32>
      %15 = tpu.matmul %12, %14, %cst {dimension_numbers = #tpu.dot_dimension_numbers<[1], [0], [0], [1], [0, 0, 1, 1], [], []>} : vector<16x32xbf16>, vector<32x64xbf16>, vector<16x64xf32> -> vector<16x64xf32>
      %c0_8 = arith.constant 0 : index
      %c0_9 = arith.constant 0 : index
      %c0_10 = arith.constant 0 : index
      %16 = vector.load %arg5[%c0_8, %c0_9, %c0_10] : memref<1x32x64xbf16, #tpu.memory_space<vmem>>, vector<1x32x64xbf16>
      %17 = vector.shape_cast %16 : vector<1x32x64xbf16> to vector<32x64xbf16>
      %cst_11 = arith.constant dense<0.000000e+00> : vector<16x64xf32>
      %18 = tpu.matmul %12, %17, %cst_11 {dimension_numbers = #tpu.dot_dimension_numbers<[1], [0], [0], [1], [0, 0, 1, 1], [], []>} : vector<16x32xbf16>, vector<32x64xbf16>, vector<16x64xf32> -> vector<16x64xf32>
      %cst_12 = arith.constant 0.636619746 : f32
      %19 = math.sqrt %cst_12 : f32
      %cst_13 = arith.constant 5.000000e-01 : f32
      %20 = vector.broadcast %cst_13 : f32 to vector<16x64xf32>
      %21 = arith.mulf %20, %15 : vector<16x64xf32>
      %cst_14 = arith.constant 4.471500e-02 : f32
      %22 = vector.broadcast %cst_14 : f32 to vector<16x64xf32>
      %23 = arith.mulf %22, %15 : vector<16x64xf32>
      %24 = arith.mulf %23, %15 : vector<16x64xf32>
      %25 = arith.mulf %24, %15 : vector<16x64xf32>
      %26 = arith.addf %15, %25 : vector<16x64xf32>
      %27 = vector.broadcast %19 : f32 to vector<16x64xf32>
      %28 = arith.mulf %27, %26 : vector<16x64xf32>
      %29 = math.tanh %28 : vector<16x64xf32>
      %cst_15 = arith.constant 1.000000e+00 : f32
      %30 = vector.broadcast %cst_15 : f32 to vector<16x64xf32>
      %31 = arith.addf %30, %29 : vector<16x64xf32>
      %32 = arith.mulf %21, %31 : vector<16x64xf32>
      %33 = arith.mulf %32, %18 : vector<16x64xf32>
      %34 = arith.truncf %33 : vector<16x64xf32> to vector<16x64xbf16>
      %c0_16 = arith.constant 0 : index
      %c0_17 = arith.constant 0 : index
      %c0_18 = arith.constant 0 : index
      %35 = vector.load %arg6[%c0_16, %c0_17, %c0_18] : memref<1x64x32xbf16, #tpu.memory_space<vmem>>, vector<1x64x32xbf16>
      %36 = vector.shape_cast %35 : vector<1x64x32xbf16> to vector<64x32xbf16>
      %cst_19 = arith.constant dense<0.000000e+00> : vector<16x32xf32>
      %37 = tpu.matmul %34, %36, %cst_19 {dimension_numbers = #tpu.dot_dimension_numbers<[1], [0], [0], [1], [0, 0, 1, 1], [], []>} : vector<16x64xbf16>, vector<64x32xbf16>, vector<16x32xf32> -> vector<16x32xf32>
      %c0_20 = arith.constant 0 : index
      %c0_21 = arith.constant 0 : index
      %38 = vector.load %arg9[%c0_20, %c0_21] : memref<16x32xf32, #tpu.memory_space<vmem>>, vector<16x32xf32>
      %c0_22 = arith.constant 0 : index
      %c0_23 = arith.constant 0 : index
      %c0_24 = arith.constant 0 : index
      %39 = vector.load %arg7[%c0_22, %c0_23, %c0_24] : memref<1x16x1xf32, #tpu.memory_space<vmem>>, vector<1x16x1xf32>
      %40 = vector.shape_cast %39 : vector<1x16x1xf32> to vector<16x1xf32>
      %41 = vector.broadcast %40 : vector<16x1xf32> to vector<16x32xf32>
      %42 = arith.mulf %41, %37 : vector<16x32xf32>
      %43 = arith.addf %38, %42 : vector<16x32xf32>
      %c0_25 = arith.constant 0 : index
      %c0_26 = arith.constant 0 : index
      %44 = vector.load %arg9[%c0_25, %c0_26] : memref<16x32xf32, #tpu.memory_space<vmem>>, vector<16x32xf32>
      tpu.vector_store %arg9[%c0_25, %c0_26], %43 {strides = array<i32>} : memref<16x32xf32, #tpu.memory_space<vmem>>, vector<16x32xf32>,
    } else {
    }
    %c15_i32 = arith.constant 15 : i32
    %9 = arith.cmpi eq, %arg1, %c15_i32 : i32
    %10 = arith.extui %9 : i1 to i32
    %c0_i32_3 = arith.constant 0 : i32
    %11 = arith.cmpi ne, %10, %c0_i32_3 : i32
    scf.if %11 {
      %c0 = arith.constant 0 : index
      %c0_4 = arith.constant 0 : index
      %12 = vector.load %arg9[%c0, %c0_4] : memref<16x32xf32, #tpu.memory_space<vmem>>, vector<16x32xf32>
      %c0_5 = arith.constant 0 : index
      %c0_6 = arith.constant 0 : index
      %13 = vector.load %arg8[%c0_5, %c0_6] : memref<16x32xf32, #tpu.memory_space<vmem>>, vector<16x32xf32>
      tpu.vector_store %arg8[%c0_5, %c0_6], %12 {strides = array<i32>} : memref<16x32xf32, #tpu.memory_space<vmem>>, vector<16x32xf32>,
    } else {
    }
    return
  }
  func.func @transform_0(%arg0: i32, %arg1: i32, %arg2: memref<1x16xi32, #tpu.memory_space<smem>>) -> (i32, i32) {
    %c0_i32 = arith.constant 0 : i32
    %c0_i32_0 = arith.constant 0 : i32
    return %arg0, %c0_i32 : i32, i32
  }
  func.func @transform_1(%arg0: i32, %arg1: i32, %arg2: memref<1x16xi32, #tpu.memory_space<smem>>) -> (i32, i32, i32) {
    %c0_i32 = arith.constant 0 : i32
    %c0_i32_0 = arith.constant 0 : i32
    %c0_i32_1 = arith.constant 0 : i32
    return %arg1, %c0_i32, %c0_i32_0 : i32, i32, i32
  }
  func.func @transform_2(%arg0: i32, %arg1: i32, %arg2: memref<1x16xi32, #tpu.memory_space<smem>>) -> (i32, i32, i32) {
    %c0_i32 = arith.constant 0 : i32
    %c0_i32_0 = arith.constant 0 : i32
    %c0_i32_1 = arith.constant 0 : i32
    return %arg1, %c0_i32, %c0_i32_0 : i32, i32, i32
  }
  func.func @transform_3(%arg0: i32, %arg1: i32, %arg2: memref<1x16xi32, #tpu.memory_space<smem>>) -> (i32, i32, i32) {
    %c0_i32 = arith.constant 0 : i32
    %c0_i32_0 = arith.constant 0 : i32
    %c0_i32_1 = arith.constant 0 : i32
    return %arg1, %c0_i32, %c0_i32_0 : i32, i32, i32
  }
  func.func @transform_4(%arg0: i32, %arg1: i32, %arg2: memref<1x16xi32, #tpu.memory_space<smem>>) -> (i32, i32, i32) {
    %c0_i32 = arith.constant 0 : i32
    %c0_i32_0 = arith.constant 0 : i32
    return %arg1, %arg0, %c0_i32 : i32, i32, i32
  }
  func.func @transform_5(%arg0: i32, %arg1: i32, %arg2: memref<1x16xi32, #tpu.memory_space<smem>>) -> (i32, i32) {
    %c0_i32 = arith.constant 0 : i32
    %c0_i32_0 = arith.constant 0 : i32
    return %arg0, %c0_i32 : i32, i32
  }
}

</mosaic_0001>

<bundles_post_ra>
// kernel: sparse_moe_block.1
= control target key start
LH: loop header
LB: loop body
LE: loop exit
PB: predicated region body
PF: predicated region fallthrough
CT: control target
= control target key end

     0   :  { %s832_s24 = smov [#allocation4]   ;;  %s946_s0 = inlined_call_operand.vmem [shape: s32[1,16], index: 0, kind: input, shape index: {}]   ;;  %s947_s1 = inlined_call_operand.vmem [shape: bf16[16,32], index: 1, kind: input, shape index: {}]   ;;  %s948_s2 = inlined_call_operand.vmem [shape: bf16[16,32,64], index: 2, kind: input, shape index: {}]   ;;  %s949_s3 = inlined_call_operand.vmem [shape: bf16[16,32,64], index: 3, kind: input, shape index: {}]   ;;  %s950_s4 = inlined_call_operand.vmem [shape: bf16[16,64,32], index: 4, kind: input, shape index: {}]   ;;  %s951_s5 = inlined_call_operand.vmem [shape: f32[16,16,1], index: 5, kind: input, shape index: {}]   ;;  %s952_s6 = inlined_call_operand.hbm [shape: f32[16,32], index: 6, kind: output, shape index: {}]  }
   0x1   :  { %s12_s23 = sshll.u32 %s946_s0, 4  ;;  %s13_s23 = int_to_ptr.vmem [resolvable:$true] %s12_s23 }
   0x2   :  { %15 = dma.vmem_to_smem %s13_s23, 16, %s832_s24, [#allocation3] }
   0x3   :  { %814 = dma.done.wait [#allocation3], 16 }
   0x4   :  { %815 = vsyncadd [#allocation3], 4294967280 }
   0x5   :  { %18 = sfence }
   0x6   :  { %19 = vsyncpa [#allocation6], 0  ;;  %s876_s25 = smov 0   ;;  %s878_s26 = smov 0  }
   0x7   :  { %s880_s27 = smov 0  }
   0x8 LB: > { %s648_s0 = sadd.s32 4294967295, %s830_s27   ;;  %s34_s28 = sadd.s32 1, %s826_s26  ;;  %s830_s27 = sphi %s880_s27, %s25_s27   ;;  %s826_s26 = sphi %s878_s26, %s954_s26   ;;  %s822_s25 = sphi %s876_s25, %s953_s25  }
   0x9   : > { %p35_p0 = scmp.ge.s32.totalorder %s34_s28, 16  ;;  %p652_p1 = scmp.ge.s32.totalorder %s830_s27, 1 }
   0xa   : > { %p257_p2 = scmp.lt.s32.totalorder %s830_s27, 17 }
   0xb   : > { %s956_s28 = smov (%p35_p0, %s34_s28), 0 }
   0xc   : > { %p258_p3 = pnand %p652_p1, %p257_p2 }
   0xd   : > { %p310_p4 = scmp.lt.s32.totalorder (!%p258_p3), %s822_s25, 15  ;;  %p661_p5 = scmp.ne.s32.totalorder (!%p258_p3), %s822_s25, 0 }
   0xe   : > { %261 = sbr.rel (%p258_p3) target bundleno = 372 (0x174), region = 40 }
  0x13   : > { %s311_s29 = scalar_select %p310_p4, %s822_s25, 15 }
  0x14   : > { %340 = sbr.rel (%p661_p5) target bundleno = 28 (0x1c), region = 44 }
  0x15   : > { %s708_s30 = sshll.u32 %s311_s29, 4  ;;  %s710_s7 = sshll.u32 %s311_s29, 5 }
  0x16   : > { %s314_s10 = scalar_lea.vmem %s948_s2, %s708_s30  ;;  %s319_s13 = scalar_lea.vmem %s949_s3, %s708_s30 }
  0x17   : > { %s908_s16 = scalar_lea.vmem %s950_s4, %s710_s7  ;;  %s913_s19 = scalar_lea.vmem %s951_s5, %s708_s30 }
  0x19   : > { %vm341_vm0 = vcmask 261120   ;;  %v833_v0 = vmov 0.0  }
  0x1a   : > { %342 = vst.msk [vmem:[#allocation2] sm:$0xff] %vm341_vm0, %v833_v0 }
  0x1b   : > { %343 = vst.msk [vmem:[#allocation2 + $0x8] sm:$0xff] %vm341_vm0, %v833_v0 }
  0x1c PF: > { %s344_s20 = sshra.s32 %s822_s25, 7  ;;  %s349_s21 = sand.u32 127, %s822_s25 }
  0x1d   : > { %s662_s22 = sshll.u32 %s344_s20, 7 }
  0x1e   : > { %s350_s23 = sadd.s32 %s662_s22, %s349_s21 }
  0x1f   : > { %s351_s24 = sld [smem:[#allocation4 + %s350_s23]] }
  0x25   : > { %p663_p6 = scmp.eq.s32.totalorder %s351_s24, 0 }
  0x27   : > { %355 = sbr.rel (%p663_p6) target bundleno = 356 (0x164), region = 48 }
  0x2c   : > { %v714_v1 = vld [vmem:[%s314_s10 + $0x8] sm:$0xff]  ;;  %v713_v3 = vld [vmem:[%s314_s10] sm:$0xff]  ;;  %vm379_vm1 = vcmask 261120   ;;  %v720_v6 = vld [vmem:[%s908_s16 + $0x18] sm:$0xff]  ;;  %v834_v14 = vmov 0   ;;  %vm480_vm2 = vcmask 523264  }
  0x2d   : > { %v716_v2 = vld [vmem:[%s319_s13 + $0x8] sm:$0xff]  ;;  %389 = vmatpush.bf16.msra.mxu0 %v714_v1  ;;  %v715_v4 = vld [vmem:[%s319_s13] sm:$0xff]  ;;  %488 = vmatpush.bf16.msra.mxu2 %v720_v6  ;;  %v719_v7 = vld [vmem:[%s908_s16 + $0x10] sm:$0xff] }
  0x2e   : > { %419 = vmatpush.bf16.msra.mxu1 %v716_v2  ;;  %v712_v5 = vld [vmem:[%s947_s1] sm:$0xff]  ;;  %v718_v8 = vld [vmem:[%s908_s16 + $0x8] sm:$0xff]  ;;  %757 = vset.pattern.permute.xlu0 %v834_v14 }
  0x2f   : > { %v717_v9 = vld [vmem:[%s908_s16] sm:$0xff]  ;;  %v501_v20 = vld [vmem:[%s913_s19 + $0x8] sm:$0xff] }
  0x30   : > { %v500_v12 = vld [vmem:[%s913_s19] sm:$0xff]  ;;  %v499_v45 = vld [vmem:[#allocation2 + $0x8] sm:$0xff] }
  0x31   : > { %390 = vmatpush.bf16.msra.mxu0 %v713_v3  ;;  %489 = vmatpush.bf16.msra.mxu2 %v719_v7  ;;  %v498_v40 = vld [vmem:[#allocation2] sm:$0xff] }
  0x32   : > { %420 = vmatpush.bf16.msra.mxu1 %v715_v4  ;;  %504 = vperm.xlu0 %757, %v500_v12  }
  0x34   : > { %676 = vmatmul.msk.bf16.vlgmr.msra.gmra.mxu0 %vm379_vm1, %v712_v5 }
  0x35   : > { %685 = vmatmul.msk.bf16.vlgmr.msra.gmra.mxu1 %vm379_vm1, %v712_v5  ;;  %490 = vmatpush.bf16.msra.mxu2 %v718_v8 }
  0x39   : > { %491 = vmatpush.bf16.msra.mxu2 %v717_v9 }
  0x3a   : > { %509 = vperm.xlu0 %757, %v501_v20  }
  0xa4   : > { %v505_v38 = vpop.permute.xlu0 %504 }
  0xac   : > { %v510_v43 = vpop.permute.xlu0 %509 }
  0xb1   : > { %v392_v10 = vpop.f32.mrf.mxu0 }
  0xb2   : > { %v429_v11 = vmul.f32 0.044715, %v392_v10  ;;  %v422_v26 = vpop.f32.mrf.mxu1  ;;  %v427_v28 = vmul.f32 0.5, %v392_v10 }
  0xb4   : > { %v431_v13 = vmul.f32 %v429_v11, %v392_v10 }
  0xb6   : > { %v433_v15 = vmul.f32 %v431_v13, %v392_v10 }
  0xb8   : > { %v435_v16 = vadd.f32 %v433_v15, %v392_v10 }
  0xb9   : > { %v394_v17 = vpop.f32.mrf.mxu0 }
  0xba   : > { %v430_v18 = vmul.f32 0.044715, %v394_v17  ;;  %v437_v19 = vmul.f32 0.7978845, %v435_v16  ;;  %v428_v31 = vmul.f32 0.5, %v394_v17  ;;  %v424_v34 = vpop.f32.mrf.mxu1 }
  0xbc   : > { %v432_v21 = vmul.f32 %v430_v18, %v394_v17  ;;  %758 = vtanh.f32 %v437_v19 }
  0xbe   : > { %v434_v22 = vmul.f32 %v432_v21, %v394_v17 }
  0xc0   : > { %v436_v23 = vadd.f32 %v434_v22, %v394_v17 }
  0xc2   : > { %v438_v24 = vmul.f32 0.7978845, %v436_v23  ;;  %v759_v25 = vpop.eup %758 }
  0xc3   : > { %v441_v27 = vadd.f32 1.0, %v759_v25 }
  0xc4   : > { %760 = vtanh.f32 %v438_v24 }
  0xc5   : > { %v443_v30 = vmul.f32 %v441_v27, %v427_v28 }
  0xc7   : > { %v445_v35 = vmul.f32 %v443_v30, %v422_v26 }
  0xca   : > { %v761_v29 = vpop.eup %760 }
  0xcb   : > { %v442_v32 = vadd.f32 1.0, %v761_v29 }
  0xcd   : > { %v444_v33 = vmul.f32 %v442_v32, %v428_v31 }
  0xcf   : > { %v446_v36 = vmul.f32 %v444_v33, %v424_v34 }
  0xd1   : > { %v447_v37 = vpack.c.bf16 %v446_v36, %v445_v35 }
  0xd3   : > { %702 = vmatmul.msk.bf16.vlgmr.msra.gmra.mxu2 %vm480_vm2, %v447_v37 }
 0x156   : > { %v493_v39 = vpop.f32.mrf.mxu2 }
 0x157   : > { %v512_v41 = vmul.f32 %v505_v38, %v493_v39 }
 0x159   : > { %v514_v42 = vadd.f32 %v512_v41, %v498_v40 }
 0x15b   : > { %516 = vst.msk [vmem:[#allocation2] sm:$0xff] %vm379_vm1, %v514_v42 }
 0x15e   : > { %v495_v44 = vpop.f32.mrf.mxu2 }
 0x15f   : > { %v513_v46 = vmul.f32 %v510_v43, %v495_v44 }
 0x161   : > { %v515_v47 = vadd.f32 %v513_v46, %v499_v45 }
 0x163   : > { %517 = vst.msk [vmem:[#allocation2 + $0x8] sm:$0xff] %vm379_vm1, %v515_v47 }
 0x164 PF: > { %p703_p7 = scmp.ne.s32.totalorder %s822_s25, 15 }
 0x166   : > { %521 = sbr.rel (%p703_p7) target bundleno = 366 (0x16e), region = 52 }
 0x16b   : > { %v522_v48 = vld [vmem:[#allocation2] sm:$0xff]  ;;  %vm524_vm3 = vcmask 261120   ;;  %v523_v49 = vld [vmem:[#allocation2 + $0x8] sm:$0xff] }
 0x16c   : > { %525 = vst.msk [vmem:[#allocation5] sm:$0xff] %vm524_vm3, %v522_v48 }
 0x16d   : > { %526 = vst.msk [vmem:[#allocation5 + $0x8] sm:$0xff] %vm524_vm3, %v523_v49 }
 0x16e PF: > { %p725_p8 = scmp.eq.s32.totalorder %s648_s0, 15  ;;  %s537_s9 = sshll.u32 %s952_s6, 4  ;;  %s538_s9 = int_to_ptr.hbm [resolvable:$true] %s537_s9 }
 0x16f   : > { %s835_s10 = smov [#allocation5]   ;;  %s836_s12 = smov 128  }
 0x170   : > { %s535_s11 = sshll.u32 %s835_s10, 4  ;;  %s837_s25 = smov 8   ;;  %s536_s11 = int_to_ptr.vmem [resolvable:$true] %s535_s11 }
 0x171   : > { %722 = dma.vmem_to_hbm [thread:$0]  (%p725_p8), %s536_s11, 256, %s538_s9, [#allocation6], %s836_s12, %s836_s12, %s837_s25  }
 0x172   : > { %817 = dma.done.wait (%p725_p8), [#allocation6], 256  }
 0x173   : > { %819 = vsyncadd (%p725_p8), [#allocation6], 4294967040 }
 0x174 PF: > { %s25_s27 = sadd.s32 1, %s830_s27   ;;  %s953_s25 = smov %s826_s26 }
 0x175   : > { %p22_p9 = scmp.ge.s32.totalorder %s25_s27, 18   ;;  %s954_s26 = smov %s956_s28 }
 0x177   :  { %24 = sbr.rel (!%p22_p9) target bundleno = 8 (0x8), region = 92 }
 0x17c   :  { %554 = vsyncpa [#allocation6], 1 }
 0x17d   :  { %556 = vsyncpa [#allocation6 + $0x1], 1 }

</bundles_post_ra>
